<compile_context>
chip_gen: v5e
topology: v5e:2x2
jax: 0.10.0
libtpu: 0.0.40
codegen_flags: <defaults>
</compile_context>

<pallas_src>
import functools

import jax
import jax.numpy as jnp
from jax.experimental import pallas as pl
from jax.experimental.pallas import tpu as pltpu


def _round_up(x, m):
    return ((x + m - 1) // m) * m


def _mlp_kernel(x_ref, w1_ref, b1_ref, w2_ref, b2_ref, w3_ref, b3_ref, o_ref):
    """Fused 3-layer MLP forward for one batch tile.

    Matmuls run on the MXU with bf16 operands and f32 accumulation; the
    bias add / ReLU / tanh stay in f32. Input cast f32->bf16 is done here so
    the wrapper never touches the batch tensor. K=16 / N=8 MXU underfill is
    irrelevant — the kernel is memory/overhead-bound.
    """
    x = x_ref[...].astype(jnp.bfloat16)                               # (tb, K)

    h1 = jnp.dot(x, w1_ref[...], preferred_element_type=jnp.float32)
    h1 = jnp.maximum(h1 + b1_ref[...], 0.0).astype(jnp.bfloat16)      # f32 ReLU

    h2 = jnp.dot(h1, w2_ref[...], preferred_element_type=jnp.float32)
    h2 = jnp.maximum(h2 + b2_ref[...], 0.0).astype(jnp.bfloat16)      # f32 ReLU

    out = jnp.dot(h2, w3_ref[...], preferred_element_type=jnp.float32)
    o_ref[...] = jnp.tanh(out + b3_ref[...]).astype(o_ref.dtype)      # (tb, A)


def prepare_params(params):
    """One-time conversion: weights -> bf16, biases -> (1, out) f32.

    Call once outside the hot loop; generator_policy_forward expects the
    prepared dict (no per-call cast/pad ops).
    """
    return {
        "w1": params["w1"].astype(jnp.bfloat16),
        "b1": params["b1"].reshape(1, -1).astype(jnp.float32),
        "w2": params["w2"].astype(jnp.bfloat16),
        "b2": params["b2"].reshape(1, -1).astype(jnp.float32),
        "w3": params["w3"].astype(jnp.bfloat16),
        "b3": params["b3"].reshape(1, -1).astype(jnp.float32),
    }


@functools.partial(jax.jit, static_argnames=("block_b",))
def generator_policy_forward(state, prepared, block_b=2048):
    """Pallas implementation of GeneratorPolicy.forward.

    state:    [B, state_dim] float32
    prepared: output of prepare_params() — w1 [state_dim,128] bf16, b1 [1,128] f32,
              w2 [128,128] bf16, b2 [1,128] f32, w3 [128,action_dim] bf16,
              b3 [1,action_dim] f32.
    returns [B, action_dim] float32
    """
    B, state_dim = state.shape
    hidden = prepared["w1"].shape[1]
    action_dim = prepared["w3"].shape[1]

    # Batch tile: multiple of 16 (fully packed bf16 sublanes), capped at block_b,
    # and capped at ceil(B/2) so there are >=2 grid steps whenever possible
    # (lets ("parallel",) shard the batch over both TensorCores on v7x).
    tb = min(block_b, _round_up(pl.cdiv(B, 2), 16))
    tb = max(16, min(tb, _round_up(B, 16)))
    grid = (pl.cdiv(B, tb),)

    # Weights/biases are tiny (<70 KiB total) and constant across grid steps:
    # present them as whole blocks to every step.
    full = lambda r, c: pl.BlockSpec((r, c), lambda i: (0, 0))

    flops = 2 * B * (state_dim * hidden + hidden * hidden + hidden * action_dim)
    bytes_accessed = (
        state.size * 4                                                   # f32 input
        + (prepared["w1"].size + prepared["w2"].size + prepared["w3"].size) * 2
        + (prepared["b1"].size + prepared["b2"].size + prepared["b3"].size) * 4
        + B * action_dim * 4                                             # f32 output
    )
    cost = pl.CostEstimate(
        flops=flops, transcendentals=B * action_dim, bytes_accessed=bytes_accessed
    )

    return pl.pallas_call(
        _mlp_kernel,
        out_shape=jax.ShapeDtypeStruct((B, action_dim), jnp.float32),
        grid=grid,
        in_specs=[
            pl.BlockSpec((tb, state_dim), lambda i: (i, 0)),   # streamed batch tile
            full(state_dim, hidden),                           # w1
            full(1, hidden),                                   # b1
            full(hidden, hidden),                              # w2
            full(1, hidden),                                   # b2
            full(hidden, action_dim),                          # w3 (un-padded)
            full(1, action_dim),                               # b3 (un-padded)
        ],
        out_specs=pl.BlockSpec((tb, action_dim), lambda i: (i, 0)),
        compiler_params=pltpu.CompilerParams(
            dimension_semantics=("parallel",),                 # megacore-shard batch
        ),
        cost_estimate=cost,
    )(state, prepared["w1"], prepared["b1"], prepared["w2"], prepared["b2"],
      prepared["w3"], prepared["b3"])


def init_params(key, state_dim, action_dim, hidden=128):
    """Deterministic synthetic parameters (PyTorch-style uniform fan-in init)."""
    ks = jax.random.split(key, 6)

    def linear(kw, kb, fan_in, fan_out):
        bound = 1.0 / jnp.sqrt(jnp.float32(fan_in))
        w = jax.random.uniform(kw, (fan_in, fan_out), jnp.float32, -bound, bound)
        b = jax.random.uniform(kb, (1, fan_out), jnp.float32, -bound, bound)
        return w, b

    w1, b1 = linear(ks[0], ks[1], state_dim, hidden)
    w2, b2 = linear(ks[2], ks[3], hidden, hidden)
    w3, b3 = linear(ks[4], ks[5], hidden, action_dim)
    return {"w1": w1, "b1": b1, "w2": w2, "b2": b2, "w3": w3, "b3": b3}


def reference_forward(state, p):
    h1 = jnp.maximum(state @ p["w1"] + p["b1"], 0.0)
    h2 = jnp.maximum(h1 @ p["w2"] + p["b2"], 0.0)
    return jnp.tanh(h2 @ p["w3"] + p["b3"])


if __name__ == "__main__":
    key = jax.random.PRNGKey(0)
    k_state, k_params, k_big = jax.random.split(key, 3)

    state_dim, action_dim = 16, 8
    params = init_params(k_params, state_dim, action_dim)
    prepared = prepare_params(params)          # one-time weight cast (bf16)

    # Small-batch check (B=8 -> single partial tile, tb=16).
    B = 8
    state = jax.random.normal(k_state, (B, state_dim), jnp.float32)
    out = jax.block_until_ready(generator_policy_forward(state, prepared))
    ref = reference_forward(state, params)
    assert out.shape == (B, action_dim)
    # bf16 matmul operands -> relaxed tolerance vs the f32 reference.
    assert jnp.allclose(out, ref, atol=3e-2, rtol=3e-2), "mismatch vs reference (B=8)"

    # Multi-tile check with a partial last batch block (B=300 -> tb=160, 2 steps).
    B2 = 300
    state2 = jax.random.normal(k_big, (B2, state_dim), jnp.float32)
    out2 = jax.block_until_ready(generator_policy_forward(state2, prepared))
    ref2 = reference_forward(state2, params)
    assert out2.shape == (B2, action_dim)
    assert jnp.allclose(out2, ref2, atol=3e-2, rtol=3e-2), "mismatch vs reference (B=300)"

    print("KERNEL_OK")
</pallas_src>

<mosaic_0001>
module attributes {stable_mosaic.version = 11 : i64} {
  func.func @_mlp_kernel(%arg0: i32, %arg1: memref<16x16xf32, #tpu.memory_space<vmem>>, %arg2: memref<16x128xbf16, #tpu.memory_space<vmem>>, %arg3: memref<1x128xf32, #tpu.memory_space<vmem>>, %arg4: memref<128x128xbf16, #tpu.memory_space<vmem>>, %arg5: memref<1x128xf32, #tpu.memory_space<vmem>>, %arg6: memref<128x8xbf16, #tpu.memory_space<vmem>>, %arg7: memref<1x8xf32, #tpu.memory_space<vmem>>, %arg8: memref<16x8xf32, #tpu.memory_space<vmem>>) attributes {dimension_semantics = [#tpu.dimension_semantics<parallel>], iteration_bounds = array<i64: 1>, scalar_prefetch = 0 : i64, scratch_operands = 0 : i64, tpu.core_type = #tpu.core_type<tc>, window_params = [{transform_indices = @transform_0, window_bounds = array<i64: 16, 16>}, {pipeline_mode = #tpu.pipeline_mode<synchronous>, transform_indices = @transform_1, window_bounds = array<i64: 16, 128>}, {pipeline_mode = #tpu.pipeline_mode<synchronous>, transform_indices = @transform_2, window_bounds = array<i64: 1, 128>}, {pipeline_mode = #tpu.pipeline_mode<synchronous>, transform_indices = @transform_3, window_bounds = array<i64: 128, 128>}, {pipeline_mode = #tpu.pipeline_mode<synchronous>, transform_indices = @transform_4, window_bounds = array<i64: 1, 128>}, {pipeline_mode = #tpu.pipeline_mode<synchronous>, transform_indices = @transform_5, window_bounds = array<i64: 128, 8>}, {pipeline_mode = #tpu.pipeline_mode<synchronous>, transform_indices = @transform_6, window_bounds = array<i64: 1, 8>}, {transform_indices = @transform_7, window_bounds = array<i64: 16, 8>}]} {
    %c0 = arith.constant 0 : index
    %c0_0 = arith.constant 0 : index
    %0 = vector.load %arg1[%c0, %c0_0] : memref<16x16xf32, #tpu.memory_space<vmem>>, vector<16x16xf32>
    %1 = arith.truncf %0 : vector<16x16xf32> to vector<16x16xbf16>
    %c0_1 = arith.constant 0 : index
    %c0_2 = arith.constant 0 : index
    %2 = vector.load %arg2[%c0_1, %c0_2] : memref<16x128xbf16, #tpu.memory_space<vmem>>, vector<16x128xbf16>
    %cst = arith.constant dense<0.000000e+00> : vector<16x128xf32>
    %3 = tpu.matmul %1, %2, %cst {dimension_numbers = #tpu.dot_dimension_numbers<[1], [0], [0], [1], [0, 0, 1, 1], [], []>} : vector<16x16xbf16>, vector<16x128xbf16>, vector<16x128xf32> -> vector<16x128xf32>
    %c0_3 = arith.constant 0 : index
    %c0_4 = arith.constant 0 : index
    %4 = vector.load %arg3[%c0_3, %c0_4] : memref<1x128xf32, #tpu.memory_space<vmem>>, vector<1x128xf32>
    %5 = vector.broadcast %4 : vector<1x128xf32> to vector<16x128xf32>
    %6 = arith.addf %3, %5 : vector<16x128xf32>
    %cst_5 = arith.constant 0.000000e+00 : f32
    %7 = vector.broadcast %cst_5 : f32 to vector<16x128xf32>
    %8 = arith.maximumf %6, %7 : vector<16x128xf32>
    %9 = arith.truncf %8 : vector<16x128xf32> to vector<16x128xbf16>
    %c0_6 = arith.constant 0 : index
    %c0_7 = arith.constant 0 : index
    %10 = vector.load %arg4[%c0_6, %c0_7] : memref<128x128xbf16, #tpu.memory_space<vmem>>, vector<128x128xbf16>
    %cst_8 = arith.constant dense<0.000000e+00> : vector<16x128xf32>
    %11 = tpu.matmul %9, %10, %cst_8 {dimension_numbers = #tpu.dot_dimension_numbers<[1], [0], [0], [1], [0, 0, 1, 1], [], []>} : vector<16x128xbf16>, vector<128x128xbf16>, vector<16x128xf32> -> vector<16x128xf32>
    %c0_9 = arith.constant 0 : index
    %c0_10 = arith.constant 0 : index
    %12 = vector.load %arg5[%c0_9, %c0_10] : memref<1x128xf32, #tpu.memory_space<vmem>>, vector<1x128xf32>
    %13 = vector.broadcast %12 : vector<1x128xf32> to vector<16x128xf32>
    %14 = arith.addf %11, %13 : vector<16x128xf32>
    %cst_11 = arith.constant 0.000000e+00 : f32
    %15 = vector.broadcast %cst_11 : f32 to vector<16x128xf32>
    %16 = arith.maximumf %14, %15 : vector<16x128xf32>
    %17 = arith.truncf %16 : vector<16x128xf32> to vector<16x128xbf16>
    %c0_12 = arith.constant 0 : index
    %c0_13 = arith.constant 0 : index
    %18 = vector.load %arg6[%c0_12, %c0_13] : memref<128x8xbf16, #tpu.memory_space<vmem>>, vector<128x8xbf16>
    %cst_14 = arith.constant dense<0.000000e+00> : vector<16x8xf32>
    %19 = tpu.matmul %17, %18, %cst_14 {dimension_numbers = #tpu.dot_dimension_numbers<[1], [0], [0], [1], [0, 0, 1, 1], [], []>} : vector<16x128xbf16>, vector<128x8xbf16>, vector<16x8xf32> -> vector<16x8xf32>
    %c0_15 = arith.constant 0 : index
    %c0_16 = arith.constant 0 : index
    %20 = vector.load %arg7[%c0_15, %c0_16] : memref<1x8xf32, #tpu.memory_space<vmem>>, vector<1x8xf32>
    %21 = vector.broadcast %20 : vector<1x8xf32> to vector<16x8xf32>
    %22 = arith.addf %19, %21 : vector<16x8xf32>
    %23 = math.tanh %22 : vector<16x8xf32>
    %c0_17 = arith.constant 0 : index
    %c0_18 = arith.constant 0 : index
    %24 = vector.load %arg8[%c0_17, %c0_18] : memref<16x8xf32, #tpu.memory_space<vmem>>, vector<16x8xf32>
    tpu.vector_store %arg8[%c0_17, %c0_18], %23 {strides = array<i32>} : memref<16x8xf32, #tpu.memory_space<vmem>>, vector<16x8xf32>,
    return
  }
  func.func @transform_0(%arg0: i32) -> (i32, i32) {
    %c0_i32 = arith.constant 0 : i32
    %c0_i32_0 = arith.constant 0 : i32
    return %arg0, %c0_i32 : i32, i32
  }
  func.func @transform_1(%arg0: i32) -> (i32, i32) {
    %c0_i32 = arith.constant 0 : i32
    %c0_i32_0 = arith.constant 0 : i32
    %c0_i32_1 = arith.constant 0 : i32
    return %c0_i32, %c0_i32_0 : i32, i32
  }
  func.func @transform_2(%arg0: i32) -> (i32, i32) {
    %c0_i32 = arith.constant 0 : i32
    %c0_i32_0 = arith.constant 0 : i32
    %c0_i32_1 = arith.constant 0 : i32
    return %c0_i32, %c0_i32_0 : i32, i32
  }
  func.func @transform_3(%arg0: i32) -> (i32, i32) {
    %c0_i32 = arith.constant 0 : i32
    %c0_i32_0 = arith.constant 0 : i32
    %c0_i32_1 = arith.constant 0 : i32
    return %c0_i32, %c0_i32_0 : i32, i32
  }
  func.func @transform_4(%arg0: i32) -> (i32, i32) {
    %c0_i32 = arith.constant 0 : i32
    %c0_i32_0 = arith.constant 0 : i32
    %c0_i32_1 = arith.constant 0 : i32
    return %c0_i32, %c0_i32_0 : i32, i32
  }
  func.func @transform_5(%arg0: i32) -> (i32, i32) {
    %c0_i32 = arith.constant 0 : i32
    %c0_i32_0 = arith.constant 0 : i32
    %c0_i32_1 = arith.constant 0 : i32
    return %c0_i32, %c0_i32_0 : i32, i32
  }
  func.func @transform_6(%arg0: i32) -> (i32, i32) {
    %c0_i32 = arith.constant 0 : i32
    %c0_i32_0 = arith.constant 0 : i32
    %c0_i32_1 = arith.constant 0 : i32
    return %c0_i32, %c0_i32_0 : i32, i32
  }
  func.func @transform_7(%arg0: i32) -> (i32, i32) {
    %c0_i32 = arith.constant 0 : i32
    %c0_i32_0 = arith.constant 0 : i32
    return %arg0, %c0_i32 : i32, i32
  }
}

</mosaic_0001>

<bundles_post_ra>
// kernel: generator_policy_forward.1
= control target key start
LH: loop header
LB: loop body
LE: loop exit
PB: predicated region body
PF: predicated region fallthrough
CT: control target
= control target key end

     0   :  { %12 = vsyncpa [#allocation3], 0  ;;  %s662_s0 = inlined_call_operand.vmem [shape: f32[8,16], index: 0, kind: input, shape index: {}]   ;;  %s663_s1 = inlined_call_operand.hbm [shape: bf16[16,128], index: 1, kind: input, shape index: {}]   ;;  %s664_s2 = inlined_call_operand.hbm [shape: f32[1,128], index: 2, kind: input, shape index: {}]   ;;  %s665_s3 = inlined_call_operand.vmem [shape: bf16[128,128], index: 3, kind: input, shape index: {}]   ;;  %s666_s4 = inlined_call_operand.hbm [shape: f32[1,128], index: 4, kind: input, shape index: {}]   ;;  %s667_s5 = inlined_call_operand.vmem [shape: bf16[128,8], index: 5, kind: input, shape index: {}]   ;;  %s668_s6 = inlined_call_operand.hbm [shape: f32[1,8], index: 6, kind: input, shape index: {}]   ;;  %s669_s7 = inlined_call_operand.hbm [shape: f32[8,8], index: 7, kind: output, shape index: {}]  }
   0x1   :  { %13 = vsyncpa [#allocation6], 0 }
   0x2   :  { %14 = vsyncpa [#allocation9], 0  ;;  %s36_s26 = sshll.u32 %s664_s2, 4  ;;  %s37_s26 = int_to_ptr.hbm [resolvable:$true] %s36_s26 }
   0x3   :  { %15 = vsyncpa [#allocation4], 0  ;;  %s544_s27 = smov [#allocation5]   ;;  %s22_s8 = sshll.u32 %s663_s1, 4  ;;  %s23_s8 = int_to_ptr.hbm [resolvable:$true] %s22_s8 }
   0x4   :  { %s38_s28 = sshll.u32 %s544_s27, 4  ;;  %s545_s9 = smov [#allocation2]   ;;  %s39_s28 = int_to_ptr.vmem [resolvable:$true] %s38_s28 }
   0x5   :  { %41 = dma.hbm_to_vmem [thread:$0]  %s37_s26, 16, %s39_s28, [#allocation6]  }
   0x6   :  { %s24_s10 = sshll.u32 %s545_s9, 4  ;;  %s546_s11 = smov 64   ;;  %s25_s10 = int_to_ptr.vmem [resolvable:$true] %s24_s10 }
   0x7   :  { %s547_s12 = smov 4   ;;  %s49_s2 = sshll.u32 %s666_s4, 4  ;;  %s50_s2 = int_to_ptr.hbm [resolvable:$true] %s49_s2 }
   0x8   :  { %30 = dma.hbm_to_vmem [thread:$0]  %s23_s8, 128, %s25_s10, [#allocation3], %s546_s11, %s546_s11, %s547_s12  }
   0x9   :  { %s548_s15 = smov [#allocation7]   ;;  %s62_s1 = sshll.u32 %s668_s6, 4  ;;  %s63_s1 = int_to_ptr.hbm [resolvable:$true] %s62_s1 }
   0xa   :  { %s51_s16 = sshll.u32 %s548_s15, 4  ;;  %s549_s19 = smov [#allocation8]   ;;  %s52_s16 = int_to_ptr.vmem [resolvable:$true] %s51_s16 }
   0xb   :  { %54 = dma.hbm_to_vmem [thread:$0]  %s50_s2, 16, %s52_s16, [#allocation6]  }
   0xc   :  { %s64_s20 = sshll.u32 %s549_s19, 4  ;;  %s65_s20 = int_to_ptr.vmem [resolvable:$true] %s64_s20 }
   0xd   :  { %67 = dma.hbm_to_vmem [thread:$0]  %s63_s1, 16, %s65_s20, [#allocation9]  }
   0xe   :  { %536 = dma.done.wait [#allocation3], 128  }
   0xf   :  { %537 = vsyncadd [#allocation3], 4294967168 }
  0x10   :  { %538 = dma.done.wait [#allocation6], 32  }
  0x11   :  { %539 = vsyncadd [#allocation6], 4294967264 }
  0x12   :  { %540 = dma.done.wait [#allocation9], 16  }
  0x13   :  { %541 = vsyncadd [#allocation9], 4294967280  ;;  %v383_v0 = vld [vmem:[#allocation2] sm:$0xff]  ;;  %v86_v2 = vld [vmem:[%s662_s0 + $0x8] sm:$0xff]  ;;  %vm100_vm0 = vcmask 130048   ;;  %vm290_vm1 = vcmask 64512  }
  0x14   :  { %v85_v1 = vld [vmem:[%s662_s0] sm:$0xff]  ;;  %v391_v4 = vld [vmem:[%s665_s3 + $0x38] sm:$0xff]  ;;  %111 = vmatpush.bf16.msra.mxu0 %v383_v0  ;;  %v390_v5 = vld [vmem:[%s665_s3 + $0x30] sm:$0xff] }
  0x15   :  { %v87_v3 = vpack.c.bf16 %v86_v2, %v85_v1  ;;  %189 = vmatpush.bf16.msra.mxu1 %v391_v4  ;;  %v389_v6 = vld [vmem:[%s665_s3 + $0x28] sm:$0xff]  ;;  %v388_v7 = vld [vmem:[%s665_s3 + $0x20] sm:$0xff]  ;;  %v387_v8 = vld [vmem:[%s665_s3 + $0x18] sm:$0xff] }
  0x16   :  { %v386_v9 = vld [vmem:[%s665_s3 + $0x10] sm:$0xff]  ;;  %v385_v10 = vld [vmem:[%s665_s3 + $0x8] sm:$0xff]  ;;  %v384_v11 = vld [vmem:[%s665_s3] sm:$0xff] }
  0x17   :  { %318 = vmatmul.msk.bf16.vlgmr.msra.gmra.mxu0 %vm100_vm0, %v87_v3  ;;  %v399_v12 = vld [vmem:[%s667_s5 + $0x38] sm:$0xff]  ;;  %v398_v13 = vld [vmem:[%s667_s5 + $0x30] sm:$0xff]  ;;  %v397_v14 = vld [vmem:[%s667_s5 + $0x28] sm:$0xff] }
  0x18   :  { %274 = vmatpush.bf16.msra.mxu2 %v399_v12  ;;  %v396_v15 = vld [vmem:[%s667_s5 + $0x20] sm:$0xff]  ;;  %v409_v17 = vld [vmem:[#allocation5] ss:$0 sm:$0xff]  ;;  %v395_v24 = vld [vmem:[%s667_s5 + $0x18] sm:$0xff] }
  0x19   :  { %190 = vmatpush.bf16.msra.mxu1 %v390_v5  ;;  %v394_v25 = vld [vmem:[%s667_s5 + $0x10] sm:$0xff]  ;;  %v393_v26 = vld [vmem:[%s667_s5 + $0x8] sm:$0xff]  ;;  %v392_v27 = vld [vmem:[%s667_s5] sm:$0xff] }
  0x1a   :  { %v410_v29 = vld [vmem:[#allocation7] ss:$0 sm:$0xff]  ;;  %v411_v36 = vld [vmem:[#allocation8] ss:$0 sm:$0xff] }
  0x1c   :  { %275 = vmatpush.bf16.msra.mxu2 %v398_v13 }
  0x1d   :  { %191 = vmatpush.bf16.msra.mxu1 %v389_v6 }
  0x20   :  { %276 = vmatpush.bf16.msra.mxu2 %v397_v14 }
  0x21   :  { %192 = vmatpush.bf16.msra.mxu1 %v388_v7 }
  0x24   :  { %277 = vmatpush.bf16.msra.mxu2 %v396_v15 }
  0x25   :  { %193 = vmatpush.bf16.msra.mxu1 %v387_v8 }
  0x28   :  { %278 = vmatpush.bf16.msra.mxu2 %v395_v24 }
  0x29   :  { %194 = vmatpush.bf16.msra.mxu1 %v386_v9 }
  0x2c   :  { %279 = vmatpush.bf16.msra.mxu2 %v394_v25 }
  0x2d   :  { %195 = vmatpush.bf16.msra.mxu1 %v385_v10 }
  0x30   :  { %280 = vmatpush.bf16.msra.mxu2 %v393_v26 }
  0x31   :  { %196 = vmatpush.bf16.msra.mxu1 %v384_v11 }
  0x34   :  { %281 = vmatpush.bf16.msra.mxu2 %v392_v27 }
  0x94   :  { %v113_v16 = vpop.f32.mrf.mxu0 }
  0x95   :  { %v114_v18 = vadd.f32 %v409_v17, %v113_v16 }
  0x97   :  { %v118_v21 = vmax.f32 %v114_v18, 0.0 }
  0x9c   :  { %v115_v19 = vpop.f32.mrf.mxu0 }
  0x9d   :  { %v116_v20 = vadd.f32 %v409_v17, %v115_v19 }
  0x9f   :  { %v119_v22 = vmax.f32 %v116_v20, 0.0 }
  0xa1   :  { %v120_v23 = vpack.c.bf16 %v119_v22, %v118_v21 }
  0xa3   :  { %197 = vmatmul.bf16.vlgmr.msra.gmra.mxu1 %v120_v23 }
 0x120   :  { %v198_v28 = vpop.f32.mrf.mxu1 }
 0x121   :  { %v199_v30 = vadd.f32 %v410_v29, %v198_v28 }
 0x123   :  { %v203_v33 = vmax.f32 %v199_v30, 0.0 }
 0x128   :  { %v200_v31 = vpop.f32.mrf.mxu1 }
 0x129   :  { %v201_v32 = vadd.f32 %v410_v29, %v200_v31 }
 0x12b   :  { %v204_v34 = vmax.f32 %v201_v32, 0.0 }
 0x12d   :  { %v205_v35 = vpack.c.bf16 %v204_v34, %v203_v33 }
 0x12f   :  { %282 = vmatmul.bf16.vlgmr.msra.gmra.mxu2 %v205_v35 }
 0x1b2   :  { %v283_v37 = vpop.f32.mrf.mxu2 }
 0x1b3   :  { %v284_v38 = vadd.f32 %v411_v36, %v283_v37 }
 0x1b5   :  { %412 = vtanh.f32 %v284_v38 }
 0x1ba   :  { %v285_v39 = vpop.f32.mrf.mxu2 }
 0x1bb   :  { %v413_v40 = vpop.eup %412  ;;  %v286_v41 = vadd.f32 %v411_v36, %v285_v39 }
 0x1bc   :  { %291 = vst.msk [vmem:[#allocation10] sm:$0xff] %vm290_vm1, %v413_v40 }
 0x1bd   :  { %414 = vtanh.f32 %v286_v41 }
 0x1c3   :  { %v415_v42 = vpop.eup %414 }
 0x1c4   :  { %292 = vst.msk [vmem:[#allocation10 + $0x8] sm:$0xff] %vm290_vm1, %v415_v42 }
 0x1c5   :  { %296 = vsyncadd [#allocation4], 128  ;;  %s299_s27 = sshll.u32 %s669_s7, 4  ;;  %s550_s28 = smov [#allocation10]   ;;  %s300_s27 = int_to_ptr.hbm [resolvable:$true] %s299_s27 }
 0x1c6   :  { %s297_s0 = sshll.u32 %s550_s28, 4  ;;  %s551_s29 = smov 128   ;;  %s298_s0 = int_to_ptr.vmem [resolvable:$true] %s297_s0 }
 0x1c7   :  { %s552_s30 = smov 8  }
 0x1c8   :  { %305 = dma.vmem_to_hbm [thread:$0]  %s298_s0, 128, %s300_s27, [#allocation4], %s551_s29, %s551_s29, %s552_s30  }
 0x1c9   :  { %542 = dma.done.wait [#allocation4], 256  }
 0x1ca   :  { %543 = vsyncadd [#allocation4], 4294967040 }
 0x1cb   :  { %310 = vsyncpa [#allocation3], 1 }
 0x1cc   :  { %311 = vsyncpa [#allocation6], 1 }
 0x1cd   :  { %312 = vsyncpa [#allocation9], 1 }
 0x1ce   :  { %313 = vsyncpa [#allocation4], 1 }

</bundles_post_ra>
